<compile_context>
chip_gen: v7x
topology: tpu7x:2x2x1
jax: 0.10.0
libtpu: 0.0.40
codegen_flags: <defaults>
</compile_context>

<pallas_src>
import functools

import jax
import jax.numpy as jnp
from jax import lax
from jax.experimental import pallas as pl
from jax.experimental.pallas import tpu as pltpu


def _focal_ce_kernel(logits_ref, targets_ref, out_ref, acc_ref, *,
                     alpha, gamma, n_total, block_rows):
    i = pl.program_id(0)

    @pl.when(i == 0)
    def _():
        acc_ref[...] = jnp.zeros_like(acc_ref)

    logits = logits_ref[...].astype(jnp.float32)        # (TN, C)
    tgt = targets_ref[...]                              # (TN, 1) int32
    tn, c = logits.shape

    # Numerically-stable per-row logsumexp; gather the target logit from the
    # same shifted tensor so row_max never has to be re-added.
    row_max = jnp.max(logits, axis=-1, keepdims=True)                 # (TN, 1)
    shifted = logits - row_max
    sumexp = jnp.sum(jnp.exp(shifted), axis=-1, keepdims=True)        # (TN, 1)

    col_ids = lax.broadcasted_iota(jnp.int32, (tn, c), 1)
    tgt_shifted = jnp.sum(jnp.where(col_ids == tgt, shifted, 0.0),
                          axis=-1, keepdims=True)                     # (TN, 1)

    per_sample = jnp.log(sumexp) - tgt_shifted                        # (TN, 1)

    # Mask rows past the real batch (partial last tile has undefined padding).
    row_ids = lax.broadcasted_iota(jnp.int32, (tn, 1), 0) + i * block_rows
    per_sample = jnp.where(row_ids < n_total, per_sample, 0.0)

    acc_ref[...] = acc_ref[...] + jnp.sum(per_sample)

    @pl.when(i == pl.num_programs(0) - 1)
    def _():
        bce = acc_ref[...] / jnp.float32(n_total)       # (1, 1) mean CE
        pt = jnp.exp(-bce)
        base = jnp.maximum(1.0 - pt, 0.0)               # guard fractional gamma
        out_ref[...] = jnp.float32(alpha) * base ** jnp.float32(gamma) * bce


def focal_bce_loss(logits, targets, alpha=1.0, gamma=2.0, block_rows=512):
    """Pallas equivalent of FocalBCELoss.forward(logits, targets).

    logits: (N, C) float array (unnormalized scores; f32 or bf16)
    targets: (N,) integer class indices
    returns: scalar float32 loss
    """
    n, c = logits.shape
    tgt2d = targets.reshape(n, 1).astype(jnp.int32)

    # Cap per-buffer tile bytes so 2x double-buffered logits tiles (plus the
    # tiny targets/accumulator buffers) fit the default scoped VMEM everywhere.
    max_tile_bytes = 6 * 1024 * 1024
    bytes_per_row = max(1, c * jnp.dtype(logits.dtype).itemsize)
    tn_cap = max(8, (max_tile_bytes // bytes_per_row) // 8 * 8)
    limit = min(block_rows, tn_cap)
    tn = n if n <= limit else limit                     # multiple of 8 when tiled
    grid = (pl.cdiv(n, tn),)

    out = pl.pallas_call(
        functools.partial(_focal_ce_kernel, alpha=float(alpha),
                          gamma=float(gamma), n_total=n, block_rows=tn),
        out_shape=jax.ShapeDtypeStruct((1, 1), jnp.float32),
        grid=grid,
        in_specs=[
            pl.BlockSpec((tn, c), lambda i: (i, 0)),
            pl.BlockSpec((tn, 1), lambda i: (i, 0)),
        ],
        out_specs=pl.BlockSpec((1, 1), lambda i: (0, 0)),
        scratch_shapes=[pltpu.VMEM((1, 1), jnp.float32)],
        compiler_params=pltpu.CompilerParams(
            dimension_semantics=("arbitrary",)),
    )(logits, tgt2d)
    return out[0, 0]


def _reference(logits, targets, alpha=1.0, gamma=2.0):
    # plain-JAX reference matching torch.nn.CrossEntropyLoss (mean reduction)
    logits = logits.astype(jnp.float32)
    logp = jax.nn.log_softmax(logits, axis=-1)
    nll = -jnp.take_along_axis(logp, targets[:, None].astype(jnp.int32), axis=-1)[:, 0]
    bce = jnp.mean(nll)
    pt = jnp.exp(-bce)
    return alpha * (1.0 - pt) ** gamma * bce


if __name__ == "__main__":
    key = jax.random.PRNGKey(0)
    k_logits, k_tgt = jax.random.split(key)

    # Small shapes consistent with the module: batch=8 samples, 32 classes.
    N, C = 8, 32
    logits = jax.random.normal(k_logits, (N, C), dtype=jnp.float32)
    targets = jax.random.randint(k_tgt, (N,), 0, C, dtype=jnp.int32)

    loss = jax.block_until_ready(focal_bce_loss(logits, targets, alpha=1.0, gamma=2.0))
    ref = _reference(logits, targets, alpha=1.0, gamma=2.0)
    assert jnp.allclose(loss, ref, atol=1e-5, rtol=1e-5), (loss, ref)

    # Also exercise the tiled/accumulating path with a partial last tile.
    N2, C2 = 20, 32
    logits2 = jax.random.normal(k_logits, (N2, C2), dtype=jnp.float32)
    targets2 = jax.random.randint(k_tgt, (N2,), 0, C2, dtype=jnp.int32)
    loss2 = jax.block_until_ready(
        focal_bce_loss(logits2, targets2, alpha=1.0, gamma=2.0, block_rows=8))
    ref2 = _reference(logits2, targets2, alpha=1.0, gamma=2.0)
    assert jnp.allclose(loss2, ref2, atol=1e-5, rtol=1e-5), (loss2, ref2)

    print("KERNEL_OK")
</pallas_src>

<mosaic_0001>
module attributes {stable_mosaic.version = 11 : i64} {
  func.func @_focal_ce_kernel(%arg0: i32, %arg1: memref<8x32xf32, #tpu.memory_space<vmem>>, %arg2: memref<8x1xi32, #tpu.memory_space<vmem>>, %arg3: memref<1x1xf32, #tpu.memory_space<vmem>>, %arg4: memref<1x1xf32, #tpu.memory_space<vmem>>) attributes {dimension_semantics = [#tpu.dimension_semantics<arbitrary>], iteration_bounds = array<i64: 1>, scalar_prefetch = 0 : i64, scratch_operands = 1 : i64, tpu.core_type = #tpu.core_type<tc>, window_params = [{transform_indices = @transform_0, window_bounds = array<i64: 8, 32>}, {transform_indices = @transform_1, window_bounds = array<i64: 8, 1>}, {pipeline_mode = #tpu.pipeline_mode<synchronous>, transform_indices = @transform_2, window_bounds = array<i64: 1, 1>}]} {
    %c0_i32 = arith.constant 0 : i32
    %0 = arith.cmpi eq, %arg0, %c0_i32 : i32
    %1 = arith.extui %0 : i1 to i32
    %c0_i32_0 = arith.constant 0 : i32
    %2 = arith.cmpi ne, %1, %c0_i32_0 : i32
    scf.if %2 {
      %cst_16 = arith.constant 0.000000e+00 : f32
      %40 = vector.broadcast %cst_16 : f32 to vector<1x1xf32>
      %c0_17 = arith.constant 0 : index
      %c0_18 = arith.constant 0 : index
      %41 = vector.load %arg4[%c0_17, %c0_18] : memref<1x1xf32, #tpu.memory_space<vmem>>, vector<1x1xf32>
      tpu.vector_store %arg4[%c0_17, %c0_18], %40 {strides = array<i32>} : memref<1x1xf32, #tpu.memory_space<vmem>>, vector<1x1xf32>,
    } else {
    }
    %c0 = arith.constant 0 : index
    %c0_1 = arith.constant 0 : index
    %3 = vector.load %arg1[%c0, %c0_1] : memref<8x32xf32, #tpu.memory_space<vmem>>, vector<8x32xf32>
    %c0_2 = arith.constant 0 : index
    %c0_3 = arith.constant 0 : index
    %4 = vector.load %arg2[%c0_2, %c0_3] : memref<8x1xi32, #tpu.memory_space<vmem>>, vector<8x1xi32>
    %cst = arith.constant dense<0xFF800000> : vector<8xf32>
    %5 = vector.multi_reduction <maximumf>, %3, %cst [1] : vector<8x32xf32> to vector<8xf32>
    %6 = vector.shape_cast %5 : vector<8xf32> to vector<8x1xf32>
    %7 = vector.broadcast %6 : vector<8x1xf32> to vector<8x32xf32>
    %8 = arith.subf %3, %7 : vector<8x32xf32>
    %9 = math.exp %8 : vector<8x32xf32>
    %cst_4 = arith.constant dense<0.000000e+00> : vector<8xf32>
    %10 = vector.multi_reduction <add>, %9, %cst_4 [1] : vector<8x32xf32> to vector<8xf32>
    %11 = vector.shape_cast %10 : vector<8xf32> to vector<8x1xf32>
    %12 = tpu.iota {dimensions = array<i32: 1>} : vector<8x32xi32>
    %13 = vector.broadcast %4 : vector<8x1xi32> to vector<8x32xi32>
    %14 = arith.cmpi eq, %12, %13 : vector<8x32xi32>
    %cst_5 = arith.constant 0.000000e+00 : f32
    %15 = vector.broadcast %cst_5 : f32 to vector<8x32xf32>
    %16 = arith.select %14, %8, %15 : vector<8x32xi1>, vector<8x32xf32>
    %cst_6 = arith.constant dense<0.000000e+00> : vector<8xf32>
    %17 = vector.multi_reduction <add>, %16, %cst_6 [1] : vector<8x32xf32> to vector<8xf32>
    %18 = vector.shape_cast %17 : vector<8xf32> to vector<8x1xf32>
    %19 = math.log %11 : vector<8x1xf32>
    %20 = arith.subf %19, %18 : vector<8x1xf32>
    %21 = tpu.iota {dimensions = array<i32: 0>} : vector<8x1xi32>
    %c8_i32 = arith.constant 8 : i32
    %22 = arith.muli %arg0, %c8_i32 : i32
    %23 = vector.broadcast %22 : i32 to vector<8x1xi32>
    %24 = arith.addi %21, %23 : vector<8x1xi32>
    %c8_i32_7 = arith.constant 8 : i32
    %25 = vector.broadcast %c8_i32_7 : i32 to vector<8x1xi32>
    %26 = arith.cmpi slt, %24, %25 : vector<8x1xi32>
    %cst_8 = arith.constant 0.000000e+00 : f32
    %27 = vector.broadcast %cst_8 : f32 to vector<8x1xf32>
    %28 = arith.select %26, %20, %27 : vector<8x1xi1>, vector<8x1xf32>
    %c0_9 = arith.constant 0 : index
    %c0_10 = arith.constant 0 : index
    %29 = vector.load %arg4[%c0_9, %c0_10] : memref<1x1xf32, #tpu.memory_space<vmem>>, vector<1x1xf32>
    %30 = vector.shape_cast %28 : vector<8x1xf32> to vector<1x8x1xf32>
    %cst_11 = arith.constant dense<0.000000e+00> : vector<1xf32>
    %31 = vector.multi_reduction <add>, %30, %cst_11 [1, 2] : vector<1x8x1xf32> to vector<1xf32>
    %32 = vector.shape_cast %31 : vector<1xf32> to vector<1x1x1xf32>
    %33 = vector.extract %32[0, 0, 0] : f32 from vector<1x1x1xf32>
    %34 = vector.broadcast %33 : f32 to vector<1x1xf32>
    %35 = arith.addf %29, %34 : vector<1x1xf32>
    %c0_12 = arith.constant 0 : index
    %c0_13 = arith.constant 0 : index
    %36 = vector.load %arg4[%c0_12, %c0_13] : memref<1x1xf32, #tpu.memory_space<vmem>>, vector<1x1xf32>
    tpu.vector_store %arg4[%c0_12, %c0_13], %35 {strides = array<i32>} : memref<1x1xf32, #tpu.memory_space<vmem>>, vector<1x1xf32>,
    %c0_i32_14 = arith.constant 0 : i32
    %37 = arith.cmpi eq, %arg0, %c0_i32_14 : i32
    %38 = arith.extui %37 : i1 to i32
    %c0_i32_15 = arith.constant 0 : i32
    %39 = arith.cmpi ne, %38, %c0_i32_15 : i32
    scf.if %39 {
      %c0_16 = arith.constant 0 : index
      %c0_17 = arith.constant 0 : index
      %40 = vector.load %arg4[%c0_16, %c0_17] : memref<1x1xf32, #tpu.memory_space<vmem>>, vector<1x1xf32>
      %cst_18 = arith.constant 8.000000e+00 : f32
      %41 = vector.broadcast %cst_18 : f32 to vector<1x1xf32>
      %42 = arith.divf %40, %41 : vector<1x1xf32>
      %cst_19 = arith.constant 0.000000e+00 : f32
      %43 = vector.broadcast %cst_19 : f32 to vector<1x1xf32>
      %44 = arith.subf %43, %42 : vector<1x1xf32>
      %45 = math.exp %44 : vector<1x1xf32>
      %cst_20 = arith.constant 1.000000e+00 : f32
      %46 = vector.broadcast %cst_20 : f32 to vector<1x1xf32>
      %47 = arith.subf %46, %45 : vector<1x1xf32>
      %cst_21 = arith.constant 0.000000e+00 : f32
      %48 = vector.broadcast %cst_21 : f32 to vector<1x1xf32>
      %49 = arith.maximumf %47, %48 : vector<1x1xf32>
      %cst_22 = arith.constant 2.000000e+00 : f32
      %50 = vector.broadcast %cst_22 : f32 to vector<1x1xf32>
      %51 = math.powf %49, %50 : vector<1x1xf32>
      %cst_23 = arith.constant 1.000000e+00 : f32
      %52 = vector.broadcast %cst_23 : f32 to vector<1x1xf32>
      %53 = arith.mulf %52, %51 : vector<1x1xf32>
      %54 = arith.mulf %53, %42 : vector<1x1xf32>
      %c0_24 = arith.constant 0 : index
      %c0_25 = arith.constant 0 : index
      %55 = vector.load %arg3[%c0_24, %c0_25] : memref<1x1xf32, #tpu.memory_space<vmem>>, vector<1x1xf32>
      tpu.vector_store %arg3[%c0_24, %c0_25], %54 {strides = array<i32>} : memref<1x1xf32, #tpu.memory_space<vmem>>, vector<1x1xf32>,
    } else {
    }
    return
  }
  func.func @transform_0(%arg0: i32) -> (i32, i32) {
    %c0_i32 = arith.constant 0 : i32
    %c0_i32_0 = arith.constant 0 : i32
    return %arg0, %c0_i32 : i32, i32
  }
  func.func @transform_1(%arg0: i32) -> (i32, i32) {
    %c0_i32 = arith.constant 0 : i32
    %c0_i32_0 = arith.constant 0 : i32
    return %arg0, %c0_i32 : i32, i32
  }
  func.func @transform_2(%arg0: i32) -> (i32, i32) {
    %c0_i32 = arith.constant 0 : i32
    %c0_i32_0 = arith.constant 0 : i32
    %c0_i32_1 = arith.constant 0 : i32
    return %c0_i32, %c0_i32_0 : i32, i32
  }
}

</mosaic_0001>

<bundles_post_ra>
// kernel: tpu_custom_call.1
= control target key start
LH: loop header
LB: loop body
LE: loop exit
PB: predicated region body
PF: predicated region fallthrough
CT: control target
= control target key end

     0   :  { %vm20_vm0 = vcmask 261120   ;;  %s173_s0 = inlined_call_operand.vmem [shape: f32[8,32], index: 0, kind: input, shape index: {}]   ;;  %s174_s1 = inlined_call_operand.vmem [shape: s32[8,1], index: 1, kind: input, shape index: {}]   ;;  %s175_s2 = inlined_call_operand.hbm [shape: f32[1,1], index: 2, kind: output, shape index: {}]  }
   0x1   :  { %v18_v0 = vld [vmem:[%s173_s0] sm:$0xff] }
   0x2   :  { %7 = vsyncpa [#allocation4], 0  ;;  %v21_v1 = vsel %vm20_vm0, %v18_v0, -inf  ;;  %v131_v2 = vmov 0   ;;  %v19_v3 = vld [vmem:[%s174_s1] sm:$0xff]  ;;  %v30_v7 = vlaneseq  ;;  %vm51_vm2 = vcmask 7168  }
   0x3   :  { %100 = vset.pattern.permute.xlu0 %v131_v2  ;;  %vm16_vm3 = vcmask 0   ;;  %v132_v20 = vmov 0.0   ;;  %s133_s1 = smov [#allocation3]  }
   0x4   :  { %22 = vmax.xlane.f32.xlu0 %v21_v1  ;;  %v31_v8 = vand.u32 127, %v30_v7  ;;  %17 = vst.msk [vmem:[#allocation2] sm:$0x1] %vm16_vm3, %v132_v20  ;;  %s86_s13 = sshll.u32 %s133_s1, 4  ;;  %s87_s13 = int_to_ptr.vmem [resolvable:$true] %s86_s13 }
   0x5   :  { %s107_s14 = scalar_lea.vmem %s87_s13, 16  ;;  %s111_s15 = scalar_lea.vmem %s87_s13, 32 }
   0x6   :  { %p108_p0 = scmp.ne.s32.totalorder %s87_s13, %s107_s14  ;;  %p112_p1 = scmp.lt.s32.totalorder %s87_s13, %s87_s13 }
   0x7   :  { %p113_p2 = scmp.lt.s32.totalorder %s111_s15, %s107_s14 }
   0x9   :  { %p114_p3 = por %p113_p2, %p112_p1 }
   0xb   :  { %v50_v28 = vld [vmem:[#allocation2] sm:$0x1]  ;;  %p115_p4 = pnand %p114_p3, %p108_p0 }
  0x1a   :  { %33 = vperm.xlu0 %100, %v19_v3  }
  0x91   :  { %v23_v4 = vpop.xlane.xlu0 %22 }
  0x92   :  { %v24_v5 = vsub.f32 %v18_v0, %v23_v4 }
  0x94   :  { %v25_v6 = vmul.f32 1.442695, %v24_v5 }
  0x96   :  { %101 = vpow2.f32 %v25_v6 }
  0x99   :  { %v34_v9 = vpop.permute.xlu0 %33 }
  0x9a   :  { %vm35_vm1 = vcmp.eq.s32.totalorder %v31_v8, %v34_v9 }
  0x9b   :  { %v36_v12 = vsel %vm35_vm1, %v24_v5, 0.0 }
  0x9c   :  { %v37_v13 = vsel %vm20_vm0, %v36_v12, 0.0 }
  0xa0   :  { %v102_v10 = vpop.eup %101 }
  0xa1   :  { %v27_v11 = vsel %vm20_vm0, %v102_v10, 0.0 }
  0xa2   :  { %28 = vadd.xlane.f32.xlu1 %v27_v11 }
  0xa6   :  { %38 = vadd.xlane.f32.xlu1 %v37_v13 }
 0x12f   :  { %v29_v14 = vpop.xlane.xlu1 %28 }
 0x130   :  { %103 = vlog2.f32 %v29_v14 }
 0x133   :  { %v39_v17 = vpop.xlane.xlu1 %38 }
 0x13a   :  { %v104_v15 = vpop.eup %103 }
 0x13b   :  { %v41_v16 = vmul.f32 0.6931472, %v104_v15 }
 0x13d   :  { %v42_v18 = vsub.f32 %v41_v16, %v39_v17 }
 0x13f   :  { %v52_v19 = vsel %vm51_vm2, %v42_v18, 0.0 }
 0x140   :  { %53 = vadd.xlane.f32.xlu1 %v52_v19 }
 0x1cd   :  { %v54_v21 = vpop.xlane.xlu1 %53 }
 0x1ce   :  { %v55_v22 = vrot.slane %v54_v21, 4 }
 0x1d0   :  { %v56_v23 = vadd.f32 %v55_v22, %v54_v21 }
 0x1d2   :  { %v57_v24 = vrot.slane %v56_v23, 2 }
 0x1d4   :  { %v58_v25 = vadd.f32 %v57_v24, %v56_v23 }
 0x1d6   :  { %v59_v26 = vrot.slane %v58_v25, 1 }
 0x1d8   :  { %v60_v27 = vadd.f32 %v59_v26, %v58_v25 }
 0x1da   :  { %94 = vpush %v60_v27 }
 0x20b   :  { %s95_s0 = spop %94 }
 0x20c   :  { %v62_v29 = vstv %s95_s0 }
 0x20d   :  { %v63_v30 = vadd.f32 %v62_v29, %v50_v28 }
 0x20f   :  { %65 = vst.msk [vmem:[#allocation2] sm:$0x1] %vm16_vm3, %v63_v30 }
 0x216   :  { %v69_v31 = vld [vmem:[#allocation2] sm:$0x1] }
 0x217   :  { %v71_v32 = vmul.f32 0.125, %v69_v31 }
 0x219   :  { %v72_v33 = vsub.f32 0.0, %v71_v32 }
 0x21b   :  { %v73_v34 = vmul.f32 1.442695, %v72_v33 }
 0x21d   :  { %105 = vpow2.f32 %v73_v34 }
 0x227   :  { %v106_v35 = vpop.eup %105 }
 0x228   :  { %v75_v36 = vsub.f32 1.0, %v106_v35 }
 0x22a   :  { %v76_v37 = vmax.f32 %v75_v36, 0.0 }
 0x22c   :  { %v96_v38 = vmul.f32 %v76_v37, %v76_v37 }
 0x22e   :  { %v78_v39 = vmul.f32 %v96_v38, %v71_v32 }
 0x230   :  { %79 = vst.msk [vmem:[#allocation3] sm:$0x1] %vm16_vm3, %v78_v39 }
 0x231   :  { %118 = shalt.err (!%p115_p4)
}
 0x232   :  { %s119_s18 = scalar_lea.hbm %s175_s2, 16 }
 0x233   :  { %p120_p5 = scmp.ne.s32.totalorder %s175_s2, %s119_s18  ;;  %p123_p6 = scmp.lt.u32.totalorder %s119_s18, %s175_s2 }
 0x235   :  { %p125_p7 = pnand %p123_p6, %p120_p5 }
 0x237   :  { %128 = shalt.err (!%p125_p7)
}
 0x238   :  { %89 = dma.vmem_to_hbm [thread:$0]  %s87_s13, 16, %s175_s2, [#allocation4]  }
 0x239   :  { %129 = dma.done.wait [#allocation4], 16  }
 0x23a   :  { %130 = vsyncadd [#allocation4], 4294967280 }
 0x23b   :  { %93 = vsyncpa [#allocation4], 1 }

</bundles_post_ra>
